<compile_context>
chip_gen: v7x
topology: tpu7x:2x2x1
jax: 0.10.0
libtpu: 0.0.40
codegen_flags: <defaults>
</compile_context>

<pallas_src>
import math
import jax
import jax.numpy as jnp
from jax import lax
from jax.experimental import pallas as pl
from jax.experimental.pallas import tpu as pltpu


def _round_up(x, m):
    return (x + m - 1) // m * m


def fcn_kernel(x_ref, *refs):
    """refs = (w1_ref, ..., wL_ref, beta_ref, out_ref).

    One grid step processes one batch tile.  Weights/beta are pre-scaled
    (1/sqrt(in_ch) and 1/h already folded in) and resident in VMEM across
    all grid steps.
    """
    *w_refs, beta_ref, out_ref = refs
    cdt = x_ref.dtype
    y = x_ref[...]                                   # (TB, D)
    for w_ref in w_refs:                             # W: (out_ch, in_ch)
        # y @ W.T as a direct contraction over dim 1 of both operands:
        # MXU matmul with no explicit transpose of W, f32 accumulation.
        z = lax.dot_general(
            y, w_ref[...],
            dimension_numbers=(((1,), (1,)), ((), ())),
            preferred_element_type=jnp.float32)
        y = jnp.maximum(z, 0.0).astype(cdt)          # ReLU
    # Final projection; beta already carries the 1/h scale and is lane-padded.
    out = lax.dot_general(
        y, beta_ref[...],
        dimension_numbers=(((1,), (0,)), ((), ())),
        preferred_element_type=jnp.float32)
    out_ref[...] = out.astype(out_ref.dtype)


def prepare_fcn_params(weights, beta, *, compute_dtype=jnp.float32, lane=128):
    """One-time parameter preparation (NOT per forward call):
      - fold Linear1d's 1/sqrt(in_ch) into each weight (positive scale, so it
        commutes with ReLU),
      - fold the final 1/h into beta,
      - zero-pad beta's output dim up to a multiple of 128 lanes so the
        kernel's final store is lane-dense (padding columns are exactly zero
        and sliced off in the wrapper).
    """
    scaled_ws = [(w / math.sqrt(w.shape[1])).astype(compute_dtype)
                 for w in weights]
    h, out_dim = beta.shape
    out_pad = _round_up(out_dim, lane)
    beta_scaled = (beta / h).astype(compute_dtype)
    beta_padded = jnp.zeros((h, out_pad), compute_dtype)
    beta_padded = beta_padded.at[:, :out_dim].set(beta_scaled)
    return scaled_ws, beta_padded, out_dim


def fcn_forward(x, scaled_weights, beta_padded, out_dim, *,
                block_batch=None, compute_dtype=jnp.float32):
    """x: (B, C, H, W). scaled_weights / beta_padded from prepare_fcn_params."""
    B = x.shape[0]
    xf = x.reshape(B, -1).astype(compute_dtype)        # x.flatten(1)
    D = xf.shape[1]
    out_pad = beta_padded.shape[1]

    # Batch tiling: tile rows in multiples of 8 (sublane); pad B if needed.
    if block_batch is None:
        block_batch = min(512, _round_up(B, 8))
    block_batch = _round_up(block_batch, 8)
    B_pad = _round_up(B, block_batch)
    if B_pad != B:
        xf = jnp.pad(xf, ((0, B_pad - B), (0, 0)))

    grid = (B_pad // block_batch,)

    in_specs = [pl.BlockSpec((block_batch, D), lambda i: (i, 0))]
    # Weights + beta: full-array blocks, constant index_map -> DMA'd once and
    # resident in VMEM across all batch tiles.
    for w in scaled_weights:
        in_specs.append(pl.BlockSpec(w.shape, lambda i: (0, 0)))
    in_specs.append(pl.BlockSpec(beta_padded.shape, lambda i: (0, 0)))
    out_specs = pl.BlockSpec((block_batch, out_pad), lambda i: (i, 0))

    # Advisory cost estimate (helps XLA schedule surrounding ops).
    bpe = jnp.dtype(compute_dtype).itemsize
    flops = 0
    for w in scaled_weights:
        flops += 2 * B_pad * w.shape[0] * w.shape[1]
    flops += 2 * B_pad * beta_padded.shape[0] * out_pad
    bytes_accessed = (xf.size * bpe
                      + sum(w.size * bpe for w in scaled_weights)
                      + beta_padded.size * bpe
                      + B_pad * out_pad * 4)
    cost = pl.CostEstimate(flops=flops, transcendentals=0,
                           bytes_accessed=bytes_accessed)

    out = pl.pallas_call(
        fcn_kernel,
        out_shape=jax.ShapeDtypeStruct((B_pad, out_pad), jnp.float32),
        grid=grid,
        in_specs=in_specs,
        out_specs=out_specs,
        cost_estimate=cost,
        compiler_params=pltpu.CompilerParams(
            # Batch tiles are independent -> pipelined DMAs and megacore
            # sharding on v7x.  (Raise vmem_limit_bytes here if the resident
            # weight stack ever exceeds the scoped default.)
            dimension_semantics=("parallel",)),
    )(xf, *scaled_weights, beta_padded)

    return out[:B, :out_dim]


def fcn_reference(x, weights, beta):
    """Pure-JAX reference mirroring the PyTorch forward (unscaled params)."""
    y = x.reshape(x.shape[0], -1).astype(jnp.float32)
    for w in weights:
        y = (y[:, None, :] * w[None, :, :]).sum(-1) / math.sqrt(w.shape[1])
        y = jnp.maximum(y, 0.0)
    return y @ beta / beta.shape[0]


if __name__ == "__main__":
    # Small shapes consistent with the module: flatten(1) of an NCHW input.
    B, C, H, W = 16, 4, 16, 16
    input_channels = C * H * W     # 1024
    h = 128
    out_dim = 8
    num_layers = 3                 # 1 input layer + (num_layers-1) hidden layers

    key = jax.random.PRNGKey(0)
    k_x, k_beta, *k_ws = jax.random.split(key, 2 + num_layers)

    x = jax.random.normal(k_x, (B, C, H, W), dtype=jnp.float32)

    # Deterministic "torch.randn"-style parameter init (synthetic weights).
    weights = []
    in_ch = input_channels
    for li in range(num_layers):
        weights.append(jax.random.normal(k_ws[li], (h, in_ch), dtype=jnp.float32))
        in_ch = h
    beta = jax.random.normal(k_beta, (h, out_dim), dtype=jnp.float32)

    # One-time param prep: fold scales, pad beta lanes.
    scaled_ws, beta_padded, out_dim = prepare_fcn_params(
        weights, beta, compute_dtype=jnp.float32)

    # block_batch=8 so the toy run exercises a multi-step batch grid (grid=(2,)).
    out = fcn_forward(x, scaled_ws, beta_padded, out_dim, block_batch=8)
    out = jax.block_until_ready(out)

    ref = fcn_reference(x, weights, beta)
    assert out.shape == (B, out_dim), out.shape
    assert jnp.allclose(out, ref, atol=2e-4, rtol=2e-4), (
        float(jnp.max(jnp.abs(out - ref))))

    print("KERNEL_OK")
</pallas_src>

<mosaic_0001>
module attributes {stable_mosaic.version = 11 : i64} {
  func.func @fcn_kernel(%arg0: i32, %arg1: memref<8x1024xf32, #tpu.memory_space<vmem>>, %arg2: memref<128x1024xf32, #tpu.memory_space<vmem>>, %arg3: memref<128x128xf32, #tpu.memory_space<vmem>>, %arg4: memref<128x128xf32, #tpu.memory_space<vmem>>, %arg5: memref<128x128xf32, #tpu.memory_space<vmem>>, %arg6: memref<8x128xf32, #tpu.memory_space<vmem>>) attributes {dimension_semantics = [#tpu.dimension_semantics<parallel>], iteration_bounds = array<i64: 2>, scalar_prefetch = 0 : i64, scratch_operands = 0 : i64, tpu.core_type = #tpu.core_type<tc>, window_params = [{transform_indices = @transform_0, window_bounds = array<i64: 8, 1024>}, {pipeline_mode = #tpu.pipeline_mode<synchronous>, transform_indices = @transform_1, window_bounds = array<i64: 128, 1024>}, {pipeline_mode = #tpu.pipeline_mode<synchronous>, transform_indices = @transform_2, window_bounds = array<i64: 128, 128>}, {pipeline_mode = #tpu.pipeline_mode<synchronous>, transform_indices = @transform_3, window_bounds = array<i64: 128, 128>}, {pipeline_mode = #tpu.pipeline_mode<synchronous>, transform_indices = @transform_4, window_bounds = array<i64: 128, 128>}, {transform_indices = @transform_5, window_bounds = array<i64: 8, 128>}]} {
    %c0 = arith.constant 0 : index
    %c0_0 = arith.constant 0 : index
    %0 = vector.load %arg1[%c0, %c0_0] : memref<8x1024xf32, #tpu.memory_space<vmem>>, vector<8x1024xf32>
    %c0_1 = arith.constant 0 : index
    %c0_2 = arith.constant 0 : index
    %1 = vector.load %arg2[%c0_1, %c0_2] : memref<128x1024xf32, #tpu.memory_space<vmem>>, vector<128x1024xf32>
    %cst = arith.constant dense<0.000000e+00> : vector<8x128xf32>
    %2 = tpu.matmul %0, %1, %cst {dimension_numbers = #tpu.dot_dimension_numbers<[1], [1], [0], [0], [0, 0, 1, 0], [], []>} : vector<8x1024xf32>, vector<128x1024xf32>, vector<8x128xf32> -> vector<8x128xf32>
    %cst_3 = arith.constant 0.000000e+00 : f32
    %3 = vector.broadcast %cst_3 : f32 to vector<8x128xf32>
    %4 = arith.maximumf %2, %3 : vector<8x128xf32>
    %c0_4 = arith.constant 0 : index
    %c0_5 = arith.constant 0 : index
    %5 = vector.load %arg3[%c0_4, %c0_5] : memref<128x128xf32, #tpu.memory_space<vmem>>, vector<128x128xf32>
    %cst_6 = arith.constant dense<0.000000e+00> : vector<8x128xf32>
    %6 = tpu.matmul %4, %5, %cst_6 {dimension_numbers = #tpu.dot_dimension_numbers<[1], [1], [0], [0], [0, 0, 1, 0], [], []>} : vector<8x128xf32>, vector<128x128xf32>, vector<8x128xf32> -> vector<8x128xf32>
    %cst_7 = arith.constant 0.000000e+00 : f32
    %7 = vector.broadcast %cst_7 : f32 to vector<8x128xf32>
    %8 = arith.maximumf %6, %7 : vector<8x128xf32>
    %c0_8 = arith.constant 0 : index
    %c0_9 = arith.constant 0 : index
    %9 = vector.load %arg4[%c0_8, %c0_9] : memref<128x128xf32, #tpu.memory_space<vmem>>, vector<128x128xf32>
    %cst_10 = arith.constant dense<0.000000e+00> : vector<8x128xf32>
    %10 = tpu.matmul %8, %9, %cst_10 {dimension_numbers = #tpu.dot_dimension_numbers<[1], [1], [0], [0], [0, 0, 1, 0], [], []>} : vector<8x128xf32>, vector<128x128xf32>, vector<8x128xf32> -> vector<8x128xf32>
    %cst_11 = arith.constant 0.000000e+00 : f32
    %11 = vector.broadcast %cst_11 : f32 to vector<8x128xf32>
    %12 = arith.maximumf %10, %11 : vector<8x128xf32>
    %c0_12 = arith.constant 0 : index
    %c0_13 = arith.constant 0 : index
    %13 = vector.load %arg5[%c0_12, %c0_13] : memref<128x128xf32, #tpu.memory_space<vmem>>, vector<128x128xf32>
    %cst_14 = arith.constant dense<0.000000e+00> : vector<8x128xf32>
    %14 = tpu.matmul %12, %13, %cst_14 {dimension_numbers = #tpu.dot_dimension_numbers<[1], [0], [0], [1], [0, 0, 1, 1], [], []>} : vector<8x128xf32>, vector<128x128xf32>, vector<8x128xf32> -> vector<8x128xf32>
    %c0_15 = arith.constant 0 : index
    %c0_16 = arith.constant 0 : index
    %15 = vector.load %arg6[%c0_15, %c0_16] : memref<8x128xf32, #tpu.memory_space<vmem>>, vector<8x128xf32>
    tpu.vector_store %arg6[%c0_15, %c0_16], %14 {strides = array<i32>} : memref<8x128xf32, #tpu.memory_space<vmem>>, vector<8x128xf32>,
    return
  }
  func.func @transform_0(%arg0: i32) -> (i32, i32) {
    %c0_i32 = arith.constant 0 : i32
    %c0_i32_0 = arith.constant 0 : i32
    return %arg0, %c0_i32 : i32, i32
  }
  func.func @transform_1(%arg0: i32) -> (i32, i32) {
    %c0_i32 = arith.constant 0 : i32
    %c0_i32_0 = arith.constant 0 : i32
    %c0_i32_1 = arith.constant 0 : i32
    return %c0_i32, %c0_i32_0 : i32, i32
  }
  func.func @transform_2(%arg0: i32) -> (i32, i32) {
    %c0_i32 = arith.constant 0 : i32
    %c0_i32_0 = arith.constant 0 : i32
    %c0_i32_1 = arith.constant 0 : i32
    return %c0_i32, %c0_i32_0 : i32, i32
  }
  func.func @transform_3(%arg0: i32) -> (i32, i32) {
    %c0_i32 = arith.constant 0 : i32
    %c0_i32_0 = arith.constant 0 : i32
    %c0_i32_1 = arith.constant 0 : i32
    return %c0_i32, %c0_i32_0 : i32, i32
  }
  func.func @transform_4(%arg0: i32) -> (i32, i32) {
    %c0_i32 = arith.constant 0 : i32
    %c0_i32_0 = arith.constant 0 : i32
    %c0_i32_1 = arith.constant 0 : i32
    return %c0_i32, %c0_i32_0 : i32, i32
  }
  func.func @transform_5(%arg0: i32) -> (i32, i32) {
    %c0_i32 = arith.constant 0 : i32
    %c0_i32_0 = arith.constant 0 : i32
    return %arg0, %c0_i32 : i32, i32
  }
}

</mosaic_0001>

<bundles_post_ra>
// kernel: tpu_custom_call.1
= control target key start
LH: loop header
LB: loop body
LE: loop exit
PB: predicated region body
PF: predicated region fallthrough
CT: control target
= control target key end

     0   :  { %10 = vsyncpa [#allocation3], 0  ;;  %s2160_s0 = inlined_call_operand.hbm [shape: f32[16,1024], index: 0, kind: input, shape index: {}]   ;;  %s2161_s1 = inlined_call_operand.hbm [shape: f32[128,1024], index: 1, kind: input, shape index: {}]   ;;  %s2162_s2 = inlined_call_operand.hbm [shape: f32[128,128], index: 2, kind: input, shape index: {}]   ;;  %s2163_s3 = inlined_call_operand.hbm [shape: f32[128,128], index: 3, kind: input, shape index: {}]   ;;  %s2164_s4 = inlined_call_operand.hbm [shape: f32[128,128], index: 4, kind: input, shape index: {}]   ;;  %s2165_s5 = inlined_call_operand.hbm [shape: f32[16,128], index: 5, kind: output, shape index: {}]  }
   0x1   :  { %12 = vsyncpa [#allocation3 + $0x1], 0 }
   0x2   :  { %13 = vsyncpa [#allocation6], 0 }
   0x3   :  { %14 = vsyncpa [#allocation9], 0 }
   0x4   :  { %15 = vsyncpa [#allocation4], 0 }
   0x5   :  { %17 = vsyncpa [#allocation4 + $0x1], 0  ;;  %s1837_s18 = smov 0   ;;  %s1839_s19 = smov 0  }
   0x6   :  { %s1841_s20 = smov 0   ;;  %s1843_s21 = smov 0  }
   0x7 LB: > { %s1794_s22 = smov [#allocation5]   ;;  %s1858_s24 = sadd.s32 4294967295, %s1792_s21   ;;  %s1792_s21 = sphi %s1843_s21, %s2189_s21   ;;  %s1788_s20 = sphi %s1841_s20, %s2188_s20   ;;  %s1784_s19 = sphi %s1839_s19, %s2187_s19   ;;  %s1780_s18 = sphi %s1837_s18, %s2186_s18  }
   0x8   : > { %s176_s23 = sshll.u32 %s1794_s22, 4  ;;  %p1100_p0 = scmp.ge.s32.totalorder %s1792_s21, 1  ;;  %s1863_s23 = int_to_ptr.vmem [resolvable:$true] %s176_s23 }
   0x9   : > { %p2166_p1 = scmp.eq.s32.totalorder %s1858_s24, 0  ;;  %p164_p2 = scmp.lt.s32.totalorder %s1792_s21, 3 }
   0xa   : > { %s1795_s27 = smov [#allocation8]   ;;  %s1796_s29 = smov [#allocation7]  }
   0xb   : > { %p1865_p3 = pnand %p1100_p0, %p164_p2  ;;  %s202_s28 = sshll.u32 %s1795_s27, 4  ;;  %s1878_s28 = int_to_ptr.vmem [resolvable:$true] %s202_s28 }
   0xc   : > { %s1880_s30 = sshll.u32 %s1796_s29, 4  ;;  %s1576_s8 = scalar_lea.hbm %s2161_s1, 16384  ;;  %s190_s30 = int_to_ptr.vmem [resolvable:$true] %s1880_s30 }
   0xd   : > { %s2169_s25 = scalar_select %p1865_p3, 1, 0 }
   0xe   : > { %p1502_p5 = pneg %p1865_p3  ;;  %p1577_p7 = scmp.ne.s32.totalorder %s2161_s1, %s1576_s8 }
   0xf   : > { %p1583_p11 = scmp.lt.u32.totalorder %s1576_s8, %s2161_s1 }
  0x10   : > { %p1874_p6 = pnand %p1502_p5, %p2166_p1 }
  0x12   : > { %p1890_p8 = pneg %p1874_p6 }
  0x14   : > { %p1579_p9 = pnand %p1890_p8, %p1577_p7 }
  0x16   : > { %p1580_p10 = pneg %p1579_p9 }
  0x18   : > { %p1585_p12 = pnand %p1583_p11, %p1580_p10 }
  0x1a   : > { %1588 = shalt.err (!%p1585_p12)
}
  0x1b   : > { %s1589_s14 = scalar_lea.vmem %s1863_s23, 16384  ;;  %p1597_p5 = scmp.lt.s32.totalorder %s1863_s23, %s1863_s23 }
  0x1c   : > { %p1590_p13 = scmp.ne.s32.totalorder %s1863_s23, %s1589_s14  ;;  %p1598_p4 = scmp.lt.s32.totalorder %s1589_s14, %s1589_s14 }
  0x1e   : > { %p1592_p0 = pnand %p1590_p13, %p1890_p8  ;;  %p1599_p7 = por %p1598_p4, %p1597_p5 }
  0x20   : > { %p1593_p2 = pneg %p1592_p0 }
  0x22   : > { %p1600_p9 = pnand %p1599_p7, %p1593_p2 }
  0x24   : > { %1603 = shalt.err (!%p1600_p9)
}
  0x25   : > { %s1797_s15 = smov 1024   ;;  %s1798_s16 = smov 64  }
  0x26   : > { %1505 = dma.hbm_to_vmem [thread:$0]  (!%p1874_p6), %s2161_s1, 16384, %s1863_s23, [#allocation6], %s1797_s15, %s1797_s15, %s1798_s16  }
  0x27   : > { %s1604_s6 = scalar_lea.hbm %s2163_s3, 2048 }
  0x28   : > { %p1605_p4 = scmp.ne.s32.totalorder %s2163_s3, %s1604_s6  ;;  %p1611_p12 = scmp.lt.u32.totalorder %s1604_s6, %s2163_s3 }
  0x2a   : > { %p1607_p10 = pnand %p1605_p4, %p1890_p8 }
  0x2c   : > { %p1608_p11 = pneg %p1607_p10 }
  0x2e   : > { %p1613_p13 = pnand %p1611_p12, %p1608_p11 }
  0x30   : > { %1616 = shalt.err (!%p1613_p13)
}
  0x31   : > { %s1617_s23 = scalar_lea.vmem %s1878_s28, 2048  ;;  %p1625_p7 = scmp.lt.s32.totalorder %s1878_s28, %s1878_s28 }
  0x32   : > { %p1618_p0 = scmp.ne.s32.totalorder %s1878_s28, %s1617_s23  ;;  %p1626_p9 = scmp.lt.s32.totalorder %s1617_s23, %s1617_s23 }
  0x34   : > { %p1620_p2 = pnand %p1618_p0, %p1890_p8  ;;  %p1627_p4 = por %p1626_p9, %p1625_p7 }
  0x36   : > { %p1621_p5 = pneg %p1620_p2 }
  0x38   : > { %p1628_p10 = pnand %p1627_p4, %p1621_p5 }
  0x3a   : > { %1631 = shalt.err (!%p1628_p10)
}
  0x3b   : > { %s1799_s12 = smov 128   ;;  %s1800_s13 = smov 8  }
  0x3c   : > { %1511 = dma.hbm_to_vmem [thread:$0]  (!%p1874_p6), %s2163_s3, 2048, %s1878_s28, [#allocation9], %s1799_s12, %s1799_s12, %s1800_s13  }
  0x3d   : > { %s1632_s22 = scalar_lea.hbm %s2162_s2, 2048 }
  0x3e   : > { %p1633_p11 = scmp.ne.s32.totalorder %s2162_s2, %s1632_s22  ;;  %p1639_p0 = scmp.lt.u32.totalorder %s1632_s22, %s2162_s2 }
  0x40   : > { %p1635_p12 = pnand %p1633_p11, %p1890_p8 }
  0x42   : > { %p1636_p13 = pneg %p1635_p12 }
  0x44   : > { %p1641_p2 = pnand %p1639_p0, %p1636_p13 }
  0x46   : > { %1644 = shalt.err (!%p1641_p2)
}
  0x47   : > { %s1645_s8 = scalar_lea.vmem %s190_s30, 2048  ;;  %p1653_p4 = scmp.lt.s32.totalorder %s190_s30, %s190_s30 }
  0x48   : > { %p1646_p5 = scmp.ne.s32.totalorder %s190_s30, %s1645_s8  ;;  %p1654_p10 = scmp.lt.s32.totalorder %s1645_s8, %s1645_s8 }
  0x4a   : > { %p1648_p7 = pnand %p1646_p5, %p1890_p8  ;;  %p1655_p1 = por %p1654_p10, %p1653_p4 }
  0x4c   : > { %p1649_p9 = pneg %p1648_p7 }
  0x4e   : > { %p1656_p3 = pnand %p1655_p1, %p1649_p9 }
  0x50   : > { %1659 = shalt.err (!%p1656_p3)
}
  0x51   : > { %1508 = dma.hbm_to_vmem [thread:$0]  (!%p1874_p6), %s2162_s2, 2048, %s190_s30, [#allocation6], %s1799_s12, %s1799_s12, %s1800_s13  }
  0x52   : > { %s1801_s10 = smov [#allocation10]   ;;  %s1660_s16 = scalar_lea.hbm %s2164_s4, 2048 }
  0x53   : > { %s215_s23 = sshll.u32 %s1801_s10, 4  ;;  %p1661_p1 = scmp.ne.s32.totalorder %s2164_s4, %s1660_s16  ;;  %s216_s23 = int_to_ptr.vmem [resolvable:$true] %s215_s23 }
  0x54   : > { %p1667_p12 = scmp.lt.u32.totalorder %s1660_s16, %s2164_s4 }
  0x55   : > { %p1663_p3 = pnand %p1661_p1, %p1890_p8 }
  0x57   : > { %p1664_p11 = pneg %p1663_p3 }
  0x59   : > { %p1669_p13 = pnand %p1667_p12, %p1664_p11 }
  0x5b   : > { %1672 = shalt.err (!%p1669_p13)
}
  0x5c   : > { %s1673_s30 = scalar_lea.vmem %s216_s23, 2048  ;;  %p1681_p7 = scmp.lt.s32.totalorder %s216_s23, %s216_s23 }
  0x5d   : > { %p1674_p0 = scmp.ne.s32.totalorder %s216_s23, %s1673_s30  ;;  %p1682_p9 = scmp.lt.s32.totalorder %s1673_s30, %s1673_s30 }
  0x5f   : > { %p1676_p2 = pnand %p1674_p0, %p1890_p8  ;;  %p1683_p4 = por %p1682_p9, %p1681_p7 }
  0x61   : > { %p1677_p5 = pneg %p1676_p2 }
  0x63   : > { %p1684_p10 = pnand %p1683_p4, %p1677_p5 }
  0x65   : > { %1687 = shalt.err (!%p1684_p10)
}
  0x66   : > { %1514 = dma.hbm_to_vmem [thread:$0]  (!%p1874_p6), %s2164_s4, 2048, %s216_s23, [#allocation9], %s1799_s12, %s1799_s12, %s1800_s13  }
  0x67   : > { %s1099_s26 = sadd.s32 4294967294, %s1792_s21   ;;  %s1982_s11 = sadd.s32 1, %s1792_s21  }
  0x68   : > { %s27_s8 = ssub.s32 %s1792_s21, %s1982_s11  ;;  %s30_s28 = sadd.s32 1, %s1788_s20 }
  0x69   : > { %p28_p8 = scmp.eq.s32.totalorder %s27_s8, 0  ;;  %p37_p1 = scmp.ne.s32.totalorder %s1788_s20, %s1784_s19 }
  0x6a   : > { %p38_p3 = scmp.eq.s32.totalorder %s1792_s21, 0  ;;  %p43_p11 = scmp.ne.s32.totalorder %s1784_s19, %s1780_s18 }
  0x6b   : > { %s1993_s9 = scalar_select %p28_p8, %s1788_s20, %s30_s28  }
  0x6c   : > { %p1995_p12 = por %p38_p3, %p37_p1  ;;  %p2173_p13 = scmp.eq.s32.totalorder %s1858_s24, 0 }
  0x6d   : > { %p151_p0 = scmp.eq.s32.totalorder %s1858_s24, 1  ;;  %p157_p2 = scmp.eq.s32.totalorder %s1099_s26, 1 }
  0x6e   : > { %p2001_p6 = por %p2173_p13, %p43_p11  ;;  %p1527_p5 = scmp.lt.s32.totalorder %s1792_s21, 2 }
  0x6f   : > { %s229_s13 = sand.u32 1, %s1788_s20   ;;  %p2008_p7 = por %p151_p0, %p37_p1 }
  0x70   : > { %p2012_p9 = por %p157_p2, %p43_p11  ;;  %s1106_s15 = sshll.u32 %s229_s13, 6 }
  0x71   : > { %s2175_s23 = scalar_select %p2008_p7, 1, 0 }
  0x72   : > { %s2176_s14 = scalar_select %p2012_p9, 1, 0 }
  0x73   : > { %s1120_s16 = sshll.u32 %s1792_s21, 10  ;;  %s233_s29 = scalar_lea.vmem [#allocation2], %s1106_s15 }
  0x74   : > { %s2020_s27 = scalar_lea.hbm %s2160_s0, %s1120_s16  ;;  %s241_s30 = sshll.u32 %s233_s29, 4  ;;  %s2022_s30 = int_to_ptr.vmem [resolvable:$true] %s241_s30 }
  0x75   : > { %p2026_p4 = pnand %p1527_p5, %p1995_p12  ;;  %s230_s7 = scalar_lea.sflag [#allocation3], %s229_s13 }
  0x76   : > { %s1688_s26 = scalar_lea.hbm %s2020_s27, 1024  ;;  %s1693_s15 = scalar_lea.hbm %s2160_s0, 2048 }
  0x77   : > { %p1689_p10 = scmp.ne.s32.totalorder %s2020_s27, %s1688_s26  ;;  %p1690_p8 = pneg %p2026_p4 }
  0x78   : > { %p1694_p11 = scmp.lt.u32.totalorder %s2020_s27, %s2160_s0  ;;  %p1695_p12 = scmp.lt.u32.totalorder %s1693_s15, %s1688_s26 }
  0x79   : > { %p1691_p1 = pnand %p1690_p8, %p1689_p10  ;;  %p1697_p0 = scmp.lt.u32.totalorder %s1688_s26, %s2020_s27 }
  0x7a   : > { %p1696_p13 = por %p1695_p12, %p1694_p11 }
  0x7b   : > { %p1692_p3 = pneg %p1691_p1 }
  0x7c   : > { %p1698_p2 = por %p1697_p0, %p1696_p13 }
  0x7e   : > { %p1699_p5 = pnand %p1698_p2, %p1692_p3 }
  0x80   : > { %1702 = shalt.err (!%p1699_p5)
}
  0x81   : > { %s1703_s13 = scalar_lea.vmem %s2022_s30, 1024  ;;  %s1802_s17 = smov [#allocation2]  }
  0x82   : > { %p1704_p10 = scmp.ne.s32.totalorder %s2022_s30, %s1703_s13  ;;  %s1708_s22 = sshll.u32 %s1802_s17, 4  ;;  %s1709_s22 = int_to_ptr.vmem [resolvable:$false] %s1708_s22 }
  0x83   : > { %s1710_s29 = scalar_lea.vmem %s1709_s22, 2048  ;;  %p1711_p7 = scmp.lt.s32.totalorder %s2022_s30, %s1709_s22 }
  0x84   : > { %p1706_p1 = pnand %p1704_p10, %p1690_p8  ;;  %p1712_p11 = scmp.lt.s32.totalorder %s1710_s29, %s1703_s13 }
  0x86   : > { %p1707_p9 = pneg %p1706_p1  ;;  %p1713_p12 = por %p1712_p11, %p1711_p7 }
  0x88   : > { %p1714_p13 = pnand %p1713_p12, %p1707_p9 }
  0x8a   : > { %1717 = shalt.err (!%p1714_p13)
}
  0x8b   : > { %1518 = dma.hbm_to_vmem [thread:$0]  (!%p2026_p4), %s2020_s27, 1024, %s2022_s30, %s230_s7  }
  0x8c   : > { %p2178_p3 = scmp.ne.s32.totalorder %s2169_s25, 0 }
  0x8d   : > { %s2058_s26 = sand.u32 (!%p2178_p3), 1, %s1784_s19  }
  0x8e   : > { %250 = sbr.rel (%p2178_p3) target bundleno = 1222 (0x4c6), region = 40  ;;  %s1110_s8 = sshll.u32 (!%p2178_p3), %s2058_s26, 6 }
  0x8f   : > { %s253_s28 = scalar_lea.sflag (!%p2178_p3), [#allocation3], %s2058_s26  ;;  %s2062_s15 = scalar_lea.vmem (!%p2178_p3), [#allocation2], %s1110_s8 }
  0x95   : > { %1763 = dma.done.wait (%p2001_p6), %s253_s28, 1024  }
  0x96   : > { %1765 = vsyncadd (%p2001_p6), %s253_s28, 4294966272  ;;  %p2179_p7 = scmp.eq.s32.totalorder %s1858_s24, 0 }
  0x98   : > { %1767 = dma.done.wait (%p2179_p7), [#allocation6], 18432   ;;  %p2180_p9 = pmov %p2179_p7 }
  0x99   : > { %p2181_p4 = pmov %p2179_p7 }
  0x9a   : > { %1769 = vsyncadd (%p2180_p9), [#allocation6], 4294948864 }
  0x9b   : > { %1771 = dma.done.wait (%p2181_p4), [#allocation9], 4096   ;;  %p2182_p8 = pmov %p2181_p4 }
  0x9c   : > { %v310_v0 = vld [vmem:[#allocation5 + $0x18] sm:$0xff]  ;;  %v309_v2 = vld [vmem:[#allocation5 + $0x10] sm:$0xff]  ;;  %v308_v26 = vld [vmem:[#allocation5 + $0x8] sm:$0xff]  ;;  %vm1804_vm0 = vmmov 0   ;;  %s1115_s25 = sshll.u32 %s2058_s26, 3  ;;  %s1117_s30 = sshll.u32 %s1858_s24, 7 }
  0x9d   : > { %1773 = vsyncadd (%p2182_p8), [#allocation9], 4294963200  ;;  %v318_v1 = vld [vmem:[#allocation5 + $0x58] sm:$0xff]  ;;  %v317_v4 = vld [vmem:[#allocation5 + $0x50] sm:$0xff]  ;;  %s298_s12 = scalar_lea.vmem [#allocation11], %s1115_s25  ;;  %s2118_s10 = scalar_lea.hbm %s2165_s5, %s1117_s30 }
  0x9e   : > { %v1309_v3 = vpack.c.bf16 %v318_v1, %v310_v0  ;;  %v326_v5 = vld [vmem:[#allocation5 + $0x98] sm:$0xff]  ;;  %v1311_v7 = vpack.c.bf16 %v317_v4, %v309_v2  ;;  %v325_v9 = vld [vmem:[#allocation5 + $0x90] sm:$0xff]  ;;  %v316_v27 = vld [vmem:[#allocation5 + $0x48] sm:$0xff]  ;;  %s991_s27 = sshll.u32 %s298_s12, 4  ;;  %s978_s16 = scalar_lea.sflag [#allocation4], %s2058_s26  ;;  %s2113_s27 = int_to_ptr.vmem [resolvable:$true] %s991_s27 }
  0x9f   : > { %v334_v6 = vld [vmem:[#allocation5 + $0xd8] sm:$0xff]  ;;  %v333_v10 = vld [vmem:[#allocation5 + $0xd0] sm:$0xff]  ;;  %v307_v28 = vld [vmem:[#allocation5] sm:$0xff]  ;;  %v1277_v29 = vpack.c.bf16 %v316_v27, %v308_v26  ;;  %s1718_s13 = scalar_lea.vmem %s2113_s27, 128  ;;  %p2183_p0 = scmp.ne.s32.totalorder %s2175_s23, 0 }
  0xa0   : > { %v1313_v8 = vpack.c.bf16 %v334_v6, %v326_v5  ;;  %1310 = vmatprep.subr.bf16.mxu0 %v1309_v3  ;;  %v342_v11 = vld [vmem:[#allocation5 + $0x118] sm:$0xff]  ;;  %v1315_v13 = vpack.c.bf16 %v333_v10, %v325_v9  ;;  %v341_v16 = vld [vmem:[#allocation5 + $0x110] sm:$0xff]  ;;  %v315_v30 = vld [vmem:[#allocation5 + $0x40] sm:$0xff]  ;;  %p1719_p6 = scmp.ne.s32.totalorder %s2113_s27, %s1718_s13  ;;  %s1806_s24 = smov [#allocation11]  }
  0xa1   : > { %1312 = vmatpush1.bf16.xpose.msra.mxu0 %v1311_v7  ;;  %v350_v12 = vld [vmem:[#allocation5 + $0x158] sm:$0xff]  ;;  %v349_v17 = vld [vmem:[#allocation5 + $0x150] sm:$0xff]  ;;  %v1279_v32 = vpack.c.bf16 %v315_v30, %v307_v28  ;;  %1278 = vmatprep.subr.bf16.mxu1 %v1277_v29  ;;  %v324_v34 = vld [vmem:[#allocation5 + $0x88] sm:$0xff]  ;;  %s1722_s17 = sshll.u32 %s1806_s24, 4  ;;  %s1723_s17 = int_to_ptr.vmem [resolvable:$false] %s1722_s17 }
  0xa2   : > { %1314 = vmatprep.subr.bf16.mxu0 %v1313_v8  ;;  %v1317_v14 = vpack.c.bf16 %v350_v12, %v342_v11  ;;  %v302_v15 = vld [vmem:[%s2062_s15 + $0x18] sm:$0xff]  ;;  %v1319_v20 = vpack.c.bf16 %v349_v17, %v341_v16  ;;  %v357_v22 = vld [vmem:[#allocation5 + $0x190] sm:$0xff]  ;;  %v332_v35 = vld [vmem:[#allocation5 + $0xc8] sm:$0xff]  ;;  %p1720_p2 = pnand %p1719_p6, %p2183_p0  ;;  %s1724_s22 = scalar_lea.vmem %s1723_s17, 256 }
  0xa3   : > { %569 = vmatprep.mubr.f32.mxu0 %v302_v15  ;;  %v358_v18 = vld [vmem:[#allocation5 + $0x198] sm:$0xff]  ;;  %v365_v23 = vld [vmem:[#allocation5 + $0x1d0] sm:$0xff]  ;;  %1280 = vmatpush1.bf16.xpose.msra.mxu1 %v1279_v32  ;;  %v1281_v36 = vpack.c.bf16 %v332_v35, %v324_v34  ;;  %v323_v37 = vld [vmem:[#allocation5 + $0x80] sm:$0xff]  ;;  %p1725_p10 = scmp.lt.s32.totalorder %s2113_s27, %s1723_s17  ;;  %p1726_p1 = scmp.lt.s32.totalorder %s1724_s22, %s1718_s13 }
  0xa4   : > { %v366_v19 = vld [vmem:[#allocation5 + $0x1d8] sm:$0xff]  ;;  %v1323_v31 = vpack.c.bf16 %v365_v23, %v357_v22  ;;  %v331_v38 = vld [vmem:[#allocation5 + $0xc0] sm:$0xff]  ;;  %v340_v39 = vld [vmem:[#allocation5 + $0x108] sm:$0xff]  ;;  %p1721_p5 = pneg %p1720_p2 }
  0xa5   : > { %v1321_v21 = vpack.c.bf16 %v366_v19, %v358_v18  ;;  %v374_v24 = vld [vmem:[#allocation5 + $0x218] sm:$0xff]  ;;  %1282 = vmatprep.subr.bf16.mxu1 %v1281_v36  ;;  %v348_v40 = vld [vmem:[#allocation5 + $0x148] sm:$0xff]  ;;  %v373_v41 = vld [vmem:[#allocation5 + $0x210] sm:$0xff]  ;;  %v1283_v45 = vpack.c.bf16 %v331_v38, %v323_v37  ;;  %p1727_p11 = por %p1726_p1, %p1725_p10 }
  0xa6   : > { %v382_v25 = vld [vmem:[#allocation5 + $0x258] sm:$0xff]  ;;  %v381_v42 = vld [vmem:[#allocation5 + $0x250] sm:$0xff]  ;;  %v1285_v46 = vpack.c.bf16 %v348_v40, %v340_v39  ;;  %v339_v49 = vld [vmem:[#allocation5 + $0x100] sm:$0xff] }
  0xa7   : > { %v1325_v33 = vpack.c.bf16 %v382_v25, %v374_v24  ;;  %v390_v43 = vld [vmem:[#allocation5 + $0x298] sm:$0xff]  ;;  %v1327_v47 = vpack.c.bf16 %v381_v42, %v373_v41  ;;  %v347_v50 = vld [vmem:[#allocation5 + $0x140] sm:$0xff]  ;;  %v356_v51 = vld [vmem:[#allocation5 + $0x188] sm:$0xff]  ;;  %p1728_p12 = pnand %p1727_p11, %p1721_p5 }
  0xa8   : > { %v398_v44 = vld [vmem:[#allocation5 + $0x2d8] sm:$0xff]  ;;  %v364_v52 = vld [vmem:[#allocation5 + $0x1c8] sm:$0xff]  ;;  %v389_v53 = vld [vmem:[#allocation5 + $0x290] sm:$0xff]  ;;  %v1287_v57 = vpack.c.bf16 %v347_v50, %v339_v49 }
  0xa9   : > { %1316 = vmatpush1.bf16.xpose.msra.mxu0 %v1315_v13  ;;  %v1329_v48 = vpack.c.bf16 %v398_v44, %v390_v43  ;;  %v397_v54 = vld [vmem:[#allocation5 + $0x2d0] sm:$0xff]  ;;  %v406_v55 = vld [vmem:[#allocation5 + $0x318] sm:$0xff]  ;;  %v1289_v58 = vpack.c.bf16 %v364_v52, %v356_v51  ;;  %v355_v61 = vld [vmem:[#allocation5 + $0x180] sm:$0xff] }
  0xaa   : > { %1318 = vmatprep.subr.bf16.mxu0 %v1317_v14  ;;  %v414_v56 = vld [vmem:[#allocation5 + $0x358] sm:$0xff]  ;;  %v1331_v59 = vpack.c.bf16 %v397_v54, %v389_v53  ;;  %v363_v62 = vld [vmem:[#allocation5 + $0x1c0] sm:$0xff]  ;;  %v372_v63 = vld [vmem:[#allocation5 + $0x208] sm:$0xff] }
  0xab   : > { %1284 = vmatpush1.bf16.xpose.msra.mxu1 %v1283_v45  ;;  %v1333_v60 = vpack.c.bf16 %v414_v56, %v406_v55  ;;  %v380_v0 = vld [vmem:[#allocation5 + $0x248] sm:$0xff]  ;;  %v405_v1 = vld [vmem:[#allocation5 + $0x310] sm:$0xff]  ;;  %v422_v3 = vld [vmem:[#allocation5 + $0x398] sm:$0xff]  ;;  %v1291_v5 = vpack.c.bf16 %v363_v62, %v355_v61 }
  0xac   : > { %1286 = vmatprep.subr.bf16.mxu1 %v1285_v46  ;;  %v413_v2 = vld [vmem:[#allocation5 + $0x350] sm:$0xff]  ;;  %v430_v4 = vld [vmem:[#allocation5 + $0x3d8] sm:$0xff]  ;;  %v1293_v6 = vpack.c.bf16 %v380_v0, %v372_v63  ;;  %v371_v9 = vld [vmem:[#allocation5 + $0x200] sm:$0xff] }
  0xad   : > { %v1335_v7 = vpack.c.bf16 %v413_v2, %v405_v1  ;;  %v1337_v8 = vpack.c.bf16 %v430_v4, %v422_v3  ;;  %v379_v10 = vld [vmem:[#allocation5 + $0x240] sm:$0xff]  ;;  %v388_v11 = vld [vmem:[#allocation5 + $0x288] sm:$0xff]  ;;  %v421_v13 = vld [vmem:[#allocation5 + $0x390] sm:$0xff] }
  0xae   : > { %v396_v12 = vld [vmem:[#allocation5 + $0x2c8] sm:$0xff]  ;;  %v429_v14 = vld [vmem:[#allocation5 + $0x3d0] sm:$0xff]  ;;  %v1295_v17 = vpack.c.bf16 %v379_v10, %v371_v9  ;;  %v395_v22 = vld [vmem:[#allocation5 + $0x2c0] sm:$0xff] }
  0xaf   : > { %v312_v15 = vld [vmem:[#allocation5 + $0x28] sm:$0xff]  ;;  %v1297_v18 = vpack.c.bf16 %v396_v12, %v388_v11  ;;  %v1339_v19 = vpack.c.bf16 %v429_v14, %v421_v13  ;;  %v311_v26 = vld [vmem:[#allocation5 + $0x20] sm:$0xff]  ;;  %v301_v32 = vld [vmem:[%s2062_s15 + $0x10] sm:$0xff] }
  0xb0   : > { %v320_v16 = vld [vmem:[#allocation5 + $0x68] sm:$0xff]  ;;  %v319_v27 = vld [vmem:[#allocation5 + $0x60] sm:$0xff]  ;;  %v718_v4 = vld [vmem:[#allocation7 + $0x10] sm:$0xff] }
  0xb1   : > { %1320 = vmatpush1.bf16.xpose.msra.mxu0 %v1319_v20  ;;  %v1341_v20 = vpack.c.bf16 %v320_v16, %v312_v15  ;;  %v404_v23 = vld [vmem:[#allocation5 + $0x308] sm:$0xff]  ;;  %v403_v36 = vld [vmem:[#allocation5 + $0x300] sm:$0xff] }
  0xb2   : > { %1322 = vmatprep.subr.bf16.mxu0 %v1321_v21  ;;  %v387_v21 = vld [vmem:[#allocation5 + $0x280] sm:$0xff]  ;;  %v412_v24 = vld [vmem:[#allocation5 + $0x348] sm:$0xff] }
  0xb3   : > { %1288 = vmatpush1.bf16.xpose.msra.mxu1 %v1287_v57  ;;  %v300_v25 = vld [vmem:[%s2062_s15 + $0x8] sm:$0xff]  ;;  %v1299_v30 = vpack.c.bf16 %v395_v22, %v387_v21  ;;  %v411_v37 = vld [vmem:[#allocation5 + $0x340] sm:$0xff]  ;;  %v1803_v57 = vmov 0.0|0.0   ;;  %v722_v22 = vld [vmem:[#allocation7 + $0x30] sm:$0xff] }
  0xb4   : > { %1290 = vmatprep.subr.bf16.mxu1 %v1289_v58  ;;  %499 = vmatprep.mubr.f32.mxu1 %v300_v25  ;;  %v328_v28 = vld [vmem:[#allocation5 + $0xa8] sm:$0xff]  ;;  %v327_v40 = vld [vmem:[#allocation5 + $0xa0] sm:$0xff]  ;;  %v1303_v44 = vpack.c.bf16 %v411_v37, %v403_v36  ;;  %v322_v36 = vld [vmem:[#allocation5 + $0x78] sm:$0xff] }
  0xb5   : > { %v336_v29 = vld [vmem:[#allocation5 + $0xe8] sm:$0xff]  ;;  %v335_v41 = vld [vmem:[#allocation5 + $0xe0] sm:$0xff] }
  0xb6   : > { %v1345_v34 = vpack.c.bf16 %v336_v29, %v328_v28  ;;  %v304_v35 = vld [vmem:[%s2062_s15 + $0x28] sm:$0xff]  ;;  %v1347_v46 = vpack.c.bf16 %v335_v41, %v327_v40  ;;  %v427_v49 = vld [vmem:[#allocation5 + $0x3c0] sm:$0xff]  ;;  %v726_v40 = vld [vmem:[#allocation7 + $0x50] sm:$0xff] }
  0xb7   : > { %v420_v38 = vld [vmem:[#allocation5 + $0x388] sm:$0xff]  ;;  %v343_v50 = vld [vmem:[#allocation5 + $0x120] sm:$0xff]  ;;  %v727_v41 = vld [vmem:[#allocation7 + $0x58] sm:$0xff] }
  0xb8   : > { %v428_v39 = vld [vmem:[#allocation5 + $0x3c8] sm:$0xff]  ;;  %v351_v51 = vld [vmem:[#allocation5 + $0x160] sm:$0xff] }
  0xb9   : > { %1324 = vmatpush1.bf16.xpose.msra.mxu0 %v1323_v31  ;;  %v1301_v31 = vpack.c.bf16 %v412_v24, %v404_v23  ;;  %v344_v42 = vld [vmem:[#allocation5 + $0x128] sm:$0xff]  ;;  %v1305_v45 = vpack.c.bf16 %v428_v39, %v420_v38  ;;  %v1351_v55 = vpack.c.bf16 %v351_v51, %v343_v50  ;;  %v716_v58 = vld [vmem:[#allocation7] sm:$0xff]  ;;  %v723_v23 = vld [vmem:[#allocation7 + $0x38] sm:$0xff] }
  0xba   : > { %1326 = vmatprep.subr.bf16.mxu0 %v1325_v33  ;;  %v1343_v33 = vpack.c.bf16 %v319_v27, %v311_v26  ;;  %v352_v43 = vld [vmem:[#allocation5 + $0x168] sm:$0xff]  ;;  %v367_v61 = vld [vmem:[#allocation5 + $0x1e0] sm:$0xff]  ;;  %v1415_v28 = vpack.c.bf16 %v723_v23, %v722_v22  ;;  %v306_v50 = vld [vmem:[%s2062_s15 + $0x38] sm:$0xff] }
  0xbb   : > { %1292 = vmatpush1.bf16.xpose.msra.mxu1 %v1291_v5  ;;  %v360_v52 = vld [vmem:[#allocation5 + $0x1a8] sm:$0xff]  ;;  %v299_v0 = vld [vmem:[%s2062_s15] sm:$0xff]  ;;  %v719_v5 = vld [vmem:[#allocation7 + $0x18] sm:$0xff] }
  0xbc   : > { %1294 = vmatprep.subr.bf16.mxu1 %v1293_v6  ;;  %v368_v53 = vld [vmem:[#allocation5 + $0x1e8] sm:$0xff]  ;;  %v375_v6 = vld [vmem:[#allocation5 + $0x220] sm:$0xff]  ;;  %v1409_v10 = vpack.c.bf16 %v719_v5, %v718_v4 }
  0xbd   : > { %v1353_v56 = vpack.c.bf16 %v368_v53, %v360_v52  ;;  %v376_v62 = vld [vmem:[#allocation5 + $0x228] sm:$0xff]  ;;  %v720_v13 = vld [vmem:[#allocation7 + $0x20] sm:$0xff]  ;;  %v329_v53 = vld [vmem:[#allocation5 + $0xb0] sm:$0xff] }
  0xbe   : > { %v384_v63 = vld [vmem:[#allocation5 + $0x268] sm:$0xff]  ;;  %v391_v15 = vld [vmem:[#allocation5 + $0x2a0] sm:$0xff] }
  0xbf   : > { %v1357_v3 = vpack.c.bf16 %v384_v63, %v376_v62  ;;  %v400_v9 = vld [vmem:[#allocation5 + $0x2e8] sm:$0xff]  ;;  %v399_v16 = vld [vmem:[#allocation5 + $0x2e0] sm:$0xff]  ;;  %v731_v62 = vld [vmem:[#allocation7 + $0x78] sm:$0xff] }
  0xc0   : > { %v721_v14 = vld [vmem:[#allocation7 + $0x28] sm:$0xff]  ;;  %v407_v24 = vld [vmem:[#allocation5 + $0x320] sm:$0xff]  ;;  %v345_v63 = vld [vmem:[#allocation5 + $0x130] sm:$0xff] }
  0xc1   : > { %1328 = vmatpush1.bf16.xpose.msra.mxu0 %v1327_v47  ;;  %v1349_v47 = vpack.c.bf16 %v352_v43, %v344_v42  ;;  %v415_v25 = vld [vmem:[#allocation5 + $0x360] sm:$0xff]  ;;  %v424_v26 = vld [vmem:[#allocation5 + $0x3a8] sm:$0xff]  ;;  %v313_v42 = vld [vmem:[#allocation5 + $0x30] sm:$0xff] }
  0xc2   : > { %1330 = vmatprep.subr.bf16.mxu0 %v1329_v48  ;;  %v419_v48 = vld [vmem:[#allocation5 + $0x380] sm:$0xff]  ;;  %v432_v27 = vld [vmem:[#allocation5 + $0x3e8] sm:$0xff]  ;;  %v1367_v29 = vpack.c.bf16 %v415_v25, %v407_v24  ;;  %v321_v43 = vld [vmem:[#allocation5 + $0x70] sm:$0xff] }
  0xc3   : > { %1296 = vmatpush1.bf16.xpose.msra.mxu1 %v1295_v17  ;;  %v1307_v54 = vpack.c.bf16 %v427_v49, %v419_v48  ;;  %v408_v17 = vld [vmem:[#allocation5 + $0x328] sm:$0xff]  ;;  %v1375_v48 = vpack.c.bf16 %v321_v43, %v313_v42  ;;  %v728_v51 = vld [vmem:[#allocation7 + $0x60] sm:$0xff]  ;;  %v409_v24 = vld [vmem:[#allocation5 + $0x330] sm:$0xff] }
  0xc4   : > { %1298 = vmatprep.subr.bf16.mxu1 %v1297_v18  ;;  %v416_v18 = vld [vmem:[#allocation5 + $0x368] sm:$0xff]  ;;  %v417_v25 = vld [vmem:[#allocation5 + $0x370] sm:$0xff] }
  0xc5   : > { %v1365_v21 = vpack.c.bf16 %v416_v18, %v408_v17  ;;  %v729_v52 = vld [vmem:[#allocation7 + $0x68] sm:$0xff]  ;;  %v393_v18 = vld [vmem:[#allocation5 + $0x2b0] sm:$0xff] }
  0xc9   : > { %1332 = vmatpush1.bf16.xpose.msra.mxu0 %v1331_v59  ;;  %v717_v59 = vld [vmem:[#allocation7 + $0x8] sm:$0xff] }
  0xca   : > { %1334 = vmatprep.subr.bf16.mxu0 %v1333_v60  ;;  %v359_v60 = vld [vmem:[#allocation5 + $0x1a0] sm:$0xff]  ;;  %v1406_v1 = vpack.c.bf16 %v717_v59, %v716_v58  ;;  %v1424_v58 = vpack.c.bf16 %v729_v52, %v728_v51  ;;  %v810_v51 = vld [vmem:[#allocation8 + $0x38] sm:$0xff] }
  0xcb   : > { %1300 = vmatpush1.bf16.xpose.msra.mxu1 %v1299_v30  ;;  %v1355_v2 = vpack.c.bf16 %v367_v61, %v359_v60  ;;  %v1369_v30 = vpack.c.bf16 %v432_v27, %v424_v26  ;;  %v730_v61 = vld [vmem:[#allocation7 + $0x70] sm:$0xff]  ;;  %v426_v26 = vld [vmem:[#allocation5 + $0x3b8] sm:$0xff] }
  0xcc   : > { %1302 = vmatprep.subr.bf16.mxu1 %v1301_v31  ;;  %v724_v31 = vld [vmem:[#allocation7 + $0x40] sm:$0xff]  ;;  %v434_v27 = vld [vmem:[#allocation5 + $0x3f8] sm:$0xff] }
  0xd1   : > { %1336 = vmatpush1.bf16.xpose.msra.mxu0 %v1335_v7  ;;  %v383_v7 = vld [vmem:[#allocation5 + $0x260] sm:$0xff] }
  0xd2   : > { %1338 = vmatprep.subr.bf16.mxu0 %v1337_v8  ;;  %v392_v8 = vld [vmem:[#allocation5 + $0x2a8] sm:$0xff]  ;;  %v1359_v11 = vpack.c.bf16 %v383_v7, %v375_v6  ;;  %v361_v6 = vld [vmem:[#allocation5 + $0x1b0] sm:$0xff] }
  0xd3   : > { %1304 = vmatpush1.bf16.xpose.msra.mxu1 %v1303_v44  ;;  %v1361_v12 = vpack.c.bf16 %v400_v9, %v392_v8  ;;  %v330_v44 = vld [vmem:[#allocation5 + $0xb8] sm:$0xff]  ;;  %v369_v7 = vld [vmem:[#allocation5 + $0x1f0] sm:$0xff] }
  0xd4   : > { %1306 = vmatprep.subr.bf16.mxu1 %v1305_v45  ;;  %v338_v45 = vld [vmem:[#allocation5 + $0xf8] sm:$0xff] }
  0xd5   : > { %v1377_v49 = vpack.c.bf16 %v338_v45, %v330_v44  ;;  %v378_v8 = vld [vmem:[#allocation5 + $0x238] sm:$0xff]  ;;  %v805_v44 = vld [vmem:[#allocation8 + $0x10] sm:$0xff] }
  0xd6   : > { %v386_v9 = vld [vmem:[#allocation5 + $0x278] sm:$0xff] }
  0xd7   : > { %v806_v45 = vld [vmem:[#allocation8 + $0x18] sm:$0xff] }
  0xd9   : > { %1340 = vmatpush1.bf16.xpose.msra.mxu0 %v1339_v19  ;;  %v1412_v19 = vpack.c.bf16 %v721_v14, %v720_v13  ;;  %v385_v13 = vld [vmem:[#allocation5 + $0x270] sm:$0xff]  ;;  %v394_v14 = vld [vmem:[#allocation5 + $0x2b8] sm:$0xff] }
  0xda   : > { %1342 = vmatprep.subr.bf16.mxu0 %v1341_v20  ;;  %v1363_v20 = vpack.c.bf16 %v399_v16, %v391_v15  ;;  %v402_v15 = vld [vmem:[#allocation5 + $0x2f8] sm:$0xff] }
  0xdb   : > { %1308 = vmatpush1.bf16.xpose.msra.mxu1 %v1307_v54  ;;  %v337_v54 = vld [vmem:[#allocation5 + $0xf0] sm:$0xff]  ;;  %v1393_v17 = vpack.c.bf16 %v402_v15, %v394_v14  ;;  %v897_v15 = vld [vmem:[#allocation10 + $0x38] sm:$0xff] }
  0xdc   : > { %1405 = vmatprep.subr.bf16.mxu1 %v1803_v57  ;;  %v1379_v59 = vpack.c.bf16 %v337_v54, %v329_v53  ;;  %v811_v53 = vld [vmem:[#allocation8 + $0x40] sm:$0xff]  ;;  %v812_v54 = vld [vmem:[#allocation8 + $0x48] sm:$0xff]  ;;  %v896_v14 = vld [vmem:[#allocation10 + $0x30] sm:$0xff] }
  0xe0   : > { %570 = vmatmul.mubr.f32.vlgmr.msra.gmra.mrb[0].mxu0 %v301_v32  ;;  %v725_v32 = vld [vmem:[#allocation7 + $0x48] sm:$0xff] }
  0xe1   : > { %1344 = vmatpush1.bf16.xpose.msra.mxu0 %v1343_v33  ;;  %639 = vmatprep.mubr.f32.mxu0 %v304_v35  ;;  %v423_v33 = vld [vmem:[#allocation5 + $0x3a0] sm:$0xff]  ;;  %v314_v35 = vld [vmem:[#allocation5 + $0x38] sm:$0xff]  ;;  %v1418_v37 = vpack.c.bf16 %v725_v32, %v724_v31  ;;  %v433_v31 = vld [vmem:[#allocation5 + $0x3f0] sm:$0xff] }
  0xe2   : > { %1346 = vmatprep.subr.bf16.mxu0 %v1345_v34  ;;  %500 = vmatmul.mubr.f32.vlgmr.msra.gmra.mrb[0].mxu1 %v299_v0  ;;  %v431_v34 = vld [vmem:[#allocation5 + $0x3e0] sm:$0xff]  ;;  %v1373_v39 = vpack.c.bf16 %v322_v36, %v314_v35  ;;  %v353_v0 = vld [vmem:[#allocation5 + $0x170] sm:$0xff] }
  0xe3   : > { %1407 = vmatpush3.bf16.xpose.msra.mxu1 %v1406_v1  ;;  %v1371_v38 = vpack.c.bf16 %v431_v34, %v423_v33  ;;  %v362_v1 = vld [vmem:[#allocation5 + $0x1b8] sm:$0xff]  ;;  %v1383_v4 = vpack.c.bf16 %v353_v0, %v345_v63  ;;  %v305_v33 = vld [vmem:[%s2062_s15 + $0x30] sm:$0xff]  ;;  %v1805_v34 = vmov 0.0  }
  0xe4   : > { %1408 = vmatprep.subr.bf16.mxu1 %v1803_v57  ;;  %1204 = vmatprep.mubr.msk.f32.mxu1 %vm1804_vm0, %v1805_v34  ;;  %v817_v63 = vld [vmem:[#allocation8 + $0x70] sm:$0xff]  ;;  %v818_v0 = vld [vmem:[#allocation8 + $0x78] sm:$0xff] }
  0xe9   : > { %1348 = vmatpush1.bf16.xpose.msra.mxu0 %v1347_v46  ;;  %v1421_v46 = vpack.c.bf16 %v727_v41, %v726_v40 }
  0xea   : > { %1350 = vmatprep.subr.bf16.mxu0 %v1349_v47  ;;  %v303_v47 = vld [vmem:[%s2062_s15 + $0x20] sm:$0xff] }
  0xeb   : > { %1410 = vmatpush3.bf16.xpose.msra.mxu1 %v1409_v10  ;;  %v1387_v10 = vpack.c.bf16 %v369_v7, %v361_v6 }
  0xec   : > { %1411 = vmatprep.subr.bf16.mxu1 %v1803_v57 }
  0xf1   : > { %1352 = vmatpush1.bf16.xpose.msra.mxu0 %v1351_v55  ;;  %v346_v55 = vld [vmem:[#allocation5 + $0x138] sm:$0xff] }
  0xf2   : > { %1354 = vmatprep.subr.bf16.mxu0 %v1353_v56  ;;  %v354_v56 = vld [vmem:[#allocation5 + $0x178] sm:$0xff] }
  0xf3   : > { %1413 = vmatpush3.bf16.xpose.msra.mxu1 %v1412_v19  ;;  %v1381_v60 = vpack.c.bf16 %v354_v56, %v346_v55  ;;  %v401_v19 = vld [vmem:[#allocation5 + $0x2f0] sm:$0xff]  ;;  %v1442_v55 = vpack.c.bf16 %v812_v54, %v811_v53 }
  0xf4   : > { %1414 = vmatprep.subr.bf16.mxu1 %v1803_v57  ;;  %v1395_v22 = vpack.c.bf16 %v401_v19, %v393_v18  ;;  %v813_v56 = vld [vmem:[#allocation8 + $0x50] sm:$0xff]  ;;  %v899_v18 = vld [vmem:[#allocation10 + $0x48] sm:$0xff] }
  0xf9   : > { %1356 = vmatpush1.bf16.xpose.msra.mxu0 %v1355_v2  ;;  %v370_v2 = vld [vmem:[#allocation5 + $0x1f8] sm:$0xff] }
  0xfa   : > { %1358 = vmatprep.subr.bf16.mxu0 %v1357_v3  ;;  %v1427_v3 = vpack.c.bf16 %v731_v62, %v730_v61  ;;  %v1385_v5 = vpack.c.bf16 %v370_v2, %v362_v1  ;;  %v816_v61 = vld [vmem:[#allocation8 + $0x68] sm:$0xff]  ;;  %v1451_v1 = vpack.c.bf16 %v818_v0, %v817_v63  ;;  %v890_v2 = vld [vmem:[#allocation10] sm:$0xff] }
  0xfb   : > { %1416 = vmatpush3.bf16.xpose.msra.mxu1 %v1415_v28  ;;  %v1399_v28 = vpack.c.bf16 %v417_v25, %v409_v24  ;;  %v903_v24 = vld [vmem:[#allocation10 + $0x68] sm:$0xff] }
  0xfc   : > { %1417 = vmatprep.subr.bf16.mxu1 %v1803_v57 }
 0x101   : > { %1360 = vmatpush1.bf16.xpose.msra.mxu0 %v1359_v11  ;;  %v1389_v11 = vpack.c.bf16 %v386_v9, %v378_v8  ;;  %v892_v8 = vld [vmem:[#allocation10 + $0x10] sm:$0xff]  ;;  %v893_v9 = vld [vmem:[#allocation10 + $0x18] sm:$0xff] }
 0x102   : > { %1362 = vmatprep.subr.bf16.mxu0 %v1361_v12  ;;  %v377_v12 = vld [vmem:[#allocation5 + $0x230] sm:$0xff] }
 0x103   : > { %1419 = vmatpush3.bf16.xpose.msra.mxu1 %v1418_v37  ;;  %v1391_v16 = vpack.c.bf16 %v385_v13, %v377_v12  ;;  %v803_v37 = vld [vmem:[#allocation8] sm:$0xff]  ;;  %v895_v12 = vld [vmem:[#allocation10 + $0x28] sm:$0xff] }
 0x104   : > { %1420 = vmatprep.subr.bf16.mxu1 %v1803_v57 }
 0x109   : > { %1364 = vmatpush1.bf16.xpose.msra.mxu0 %v1363_v20  ;;  %v410_v20 = vld [vmem:[#allocation5 + $0x338] sm:$0xff] }
 0x10a   : > { %1366 = vmatprep.subr.bf16.mxu0 %v1365_v21  ;;  %v418_v21 = vld [vmem:[#allocation5 + $0x378] sm:$0xff] }
 0x10b   : > { %1422 = vmatpush3.bf16.xpose.msra.mxu1 %v1421_v46  ;;  %v1397_v23 = vpack.c.bf16 %v418_v21, %v410_v20  ;;  %v1433_v46 = vpack.c.bf16 %v806_v45, %v805_v44  ;;  %v900_v20 = vld [vmem:[#allocation10 + $0x50] sm:$0xff]  ;;  %v901_v21 = vld [vmem:[#allocation10 + $0x58] sm:$0xff] }
 0x10c   : > { %1423 = vmatprep.subr.bf16.mxu1 %v1803_v57 }
 0x111   : > { %1368 = vmatpush1.bf16.xpose.msra.mxu0 %v1367_v29  ;;  %v1401_v29 = vpack.c.bf16 %v434_v27, %v426_v26  ;;  %v904_v26 = vld [vmem:[#allocation10 + $0x70] sm:$0xff]  ;;  %v905_v27 = vld [vmem:[#allocation10 + $0x78] sm:$0xff] }
 0x112   : > { %1370 = vmatprep.subr.bf16.mxu0 %v1369_v30  ;;  %v425_v30 = vld [vmem:[#allocation5 + $0x3b0] sm:$0xff] }
 0x113   : > { %1425 = vmatpush3.bf16.xpose.msra.mxu1 %v1424_v58  ;;  %v1403_v32 = vpack.c.bf16 %v433_v31, %v425_v30  ;;  %v814_v58 = vld [vmem:[#allocation8 + $0x58] sm:$0xff] }
 0x114   : > { %1426 = vmatprep.subr.bf16.mxu1 %v1803_v57 }
 0x119   : > { %1372 = vmatpush1.bf16.xpose.msra.mxu0 %v1371_v38  ;;  %v804_v38 = vld [vmem:[#allocation8 + $0x8] sm:$0xff] }
 0x11a   : > { %1374 = vmatprep.subr.bf16.mxu0 %v1373_v39  ;;  %v1430_v42 = vpack.c.bf16 %v804_v38, %v803_v37 }
 0x11b   : > { %1428 = vmatpush3.bf16.xpose.msra.mxu1 %v1427_v3  ;;  %v891_v3 = vld [vmem:[#allocation10 + $0x8] sm:$0xff] }
 0x11c   : > { %1429 = vmatprep.subr.bf16.mxu1 %v1803_v57 }
 0x120   : > { %640 = vmatmul.mubr.f32.vlgmr.msra.gmra.mrb[0].mxu0 %v303_v47  ;;  %v807_v47 = vld [vmem:[#allocation8 + $0x20] sm:$0xff] }
 0x121   : > { %1376 = vmatpush1.bf16.xpose.msra.mxu0 %v1375_v48  ;;  %709 = vmatprep.mubr.f32.mxu0 %v306_v50  ;;  %v808_v48 = vld [vmem:[#allocation8 + $0x28] sm:$0xff]  ;;  %v809_v50 = vld [vmem:[#allocation8 + $0x30] sm:$0xff] }
 0x122   : > { %1378 = vmatprep.subr.bf16.mxu0 %v1377_v49  ;;  %v1436_v49 = vpack.c.bf16 %v808_v48, %v807_v47  ;;  %v1439_v52 = vpack.c.bf16 %v810_v51, %v809_v50 }
 0x129   : > { %1380 = vmatpush1.bf16.xpose.msra.mxu0 %v1379_v59  ;;  %v1445_v59 = vpack.c.bf16 %v814_v58, %v813_v56 }
 0x12a   : > { %1382 = vmatprep.subr.bf16.mxu0 %v1381_v60  ;;  %v815_v60 = vld [vmem:[#allocation8 + $0x60] sm:$0xff] }
 0x12b   : > { %v1448_v62 = vpack.c.bf16 %v816_v61, %v815_v60 }
 0x131   : > { %1384 = vmatpush1.bf16.xpose.msra.mxu0 %v1383_v4 }
 0x132   : > { %1386 = vmatprep.subr.bf16.mxu0 %v1385_v5  ;;  %v1454_v5 = vpack.c.bf16 %v891_v3, %v890_v2 }
 0x139   : > { %1388 = vmatpush1.bf16.xpose.msra.mxu0 %v1387_v10  ;;  %v1457_v10 = vpack.c.bf16 %v893_v9, %v892_v8 }
 0x13a   : > { %1390 = vmatprep.subr.bf16.mxu0 %v1389_v11  ;;  %v894_v11 = vld [vmem:[#allocation10 + $0x20] sm:$0xff] }
 0x13b   : > { %v1460_v13 = vpack.c.bf16 %v895_v12, %v894_v11 }
 0x141   : > { %1392 = vmatpush1.bf16.xpose.msra.mxu0 %v1391_v16  ;;  %v1463_v16 = vpack.c.bf16 %v897_v15, %v896_v14 }
 0x142   : > { %1394 = vmatprep.subr.bf16.mxu0 %v1393_v17  ;;  %v898_v17 = vld [vmem:[#allocation10 + $0x40] sm:$0xff] }
 0x143   : > { %v1466_v19 = vpack.c.bf16 %v899_v18, %v898_v17 }
 0x149   : > { %1396 = vmatpush1.bf16.xpose.msra.mxu0 %v1395_v22  ;;  %v1469_v22 = vpack.c.bf16 %v901_v21, %v900_v20 }
 0x14a   : > { %1398 = vmatprep.subr.bf16.mxu0 %v1397_v23  ;;  %v902_v23 = vld [vmem:[#allocation10 + $0x60] sm:$0xff] }
 0x14b   : > { %v1472_v25 = vpack.c.bf16 %v903_v24, %v902_v23 }
 0x151   : > { %1400 = vmatpush1.bf16.xpose.msra.mxu0 %v1399_v28  ;;  %v1475_v28 = vpack.c.bf16 %v905_v27, %v904_v26 }
 0x152   : > { %1402 = vmatprep.subr.bf16.mxu0 %v1401_v29 }
 0x159   : > { %1404 = vmatpush1.bf16.xpose.msra.mxu0 %v1403_v32 }
 0x160   : > { %710 = vmatmul.mubr.f32.vlgmr.msra.gmra.mrb[0].mxu0 %v305_v33 }
 0x1b5   : > { %v501_v35 = vpop.f32.mrb[0].mxu1 }
 0x1b6   : > { %v503_v36 = vpop.f32.mrb[1].mxu1 }
 0x233   : > { %v711_v39 = vpop.f32.mrb[0].mxu0 }
 0x234   : > { %v1477_v40 = vadd.f32 %v711_v39, %v501_v35  ;;  %v713_v41 = vpop.f32.mrb[1].mxu0 }
 0x236   : > { %v715_v43 = vmax.f32 %v1477_v40, 0.0 }
 0x238   : > { %1205 = vmatmul.mubr.f32.vlgmr.msra.gmra.mrb[2].mxu1 %v715_v43 }
 0x239   : > { %1431 = vmatpush3.bf16.xpose.msra.mxu1 %v1430_v42  ;;  %1239 = vmatprep.mubr.msk.f32.mxu1 %vm1804_vm0, %v1805_v34 }
 0x23a   : > { %1432 = vmatprep.subr.bf16.mxu1 %v1803_v57 }
 0x241   : > { %1434 = vmatpush3.bf16.xpose.msra.mxu1 %v1433_v46 }
 0x242   : > { %1435 = vmatprep.subr.bf16.mxu1 %v1803_v57 }
 0x249   : > { %1437 = vmatpush3.bf16.xpose.msra.mxu1 %v1436_v49 }
 0x24a   : > { %1438 = vmatprep.subr.bf16.mxu1 %v1803_v57 }
 0x251   : > { %1440 = vmatpush3.bf16.xpose.msra.mxu1 %v1439_v52 }
 0x252   : > { %1441 = vmatprep.subr.bf16.mxu1 %v1803_v57 }
 0x259   : > { %1443 = vmatpush3.bf16.xpose.msra.mxu1 %v1442_v55 }
 0x25a   : > { %1444 = vmatprep.subr.bf16.mxu1 %v1803_v57 }
 0x261   : > { %1446 = vmatpush3.bf16.xpose.msra.mxu1 %v1445_v59 }
 0x262   : > { %1447 = vmatprep.subr.bf16.mxu1 %v1803_v57 }
 0x269   : > { %1449 = vmatpush3.bf16.xpose.msra.mxu1 %v1448_v62 }
 0x26a   : > { %1450 = vmatprep.subr.bf16.mxu1 %v1803_v57 }
 0x271   : > { %1452 = vmatpush3.bf16.xpose.msra.mxu1 %v1451_v1 }
 0x272   : > { %1453 = vmatprep.subr.bf16.mxu1 %v1803_v57 }
 0x30b   : > { %v798_v4 = vpop.f32.mrb[2].mxu1 }
 0x30c   : > { %v802_v6 = vmax.f32 %v798_v4, 0.0  ;;  %v1206_v7 = vpop.f32.mrb[3].mxu1 }
 0x30e   : > { %1240 = vmatmul.mubr.f32.vlgmr.msra.gmra.mrb[4].mxu1 %v802_v6 }
 0x30f   : > { %1455 = vmatpush3.bf16.msra.mxu1 %v1454_v5  ;;  %1274 = vmatprep.mubr.msk.f32.mxu1 %vm1804_vm0, %v1805_v34 }
 0x310   : > { %1456 = vmatprep.subr.bf16.mxu1 %v1803_v57 }
 0x313   : > { %1458 = vmatpush3.bf16.msra.mxu1 %v1457_v10 }
 0x314   : > { %1459 = vmatprep.subr.bf16.mxu1 %v1803_v57 }
 0x317   : > { %1461 = vmatpush3.bf16.msra.mxu1 %v1460_v13 }
 0x318   : > { %1462 = vmatprep.subr.bf16.mxu1 %v1803_v57 }
 0x31b   : > { %1464 = vmatpush3.bf16.msra.mxu1 %v1463_v16 }
 0x31c   : > { %1465 = vmatprep.subr.bf16.mxu1 %v1803_v57 }
 0x31f   : > { %1467 = vmatpush3.bf16.msra.mxu1 %v1466_v19 }
 0x320   : > { %1468 = vmatprep.subr.bf16.mxu1 %v1803_v57 }
 0x323   : > { %1470 = vmatpush3.bf16.msra.mxu1 %v1469_v22 }
 0x324   : > { %1471 = vmatprep.subr.bf16.mxu1 %v1803_v57 }
 0x327   : > { %1473 = vmatpush3.bf16.msra.mxu1 %v1472_v25 }
 0x328   : > { %1474 = vmatprep.subr.bf16.mxu1 %v1803_v57 }
 0x32b   : > { %1476 = vmatpush3.bf16.msra.mxu1 %v1475_v28 }
 0x3e1   : > { %v885_v29 = vpop.f32.mrb[4].mxu1 }
 0x3e2   : > { %v889_v30 = vmax.f32 %v885_v29, 0.0  ;;  %v1241_v31 = vpop.f32.mrb[5].mxu1 }
 0x3e4   : > { %1275 = vmatmul.mubr.f32.vlgmr.msra.gmra.mrb[6].mxu1 %v889_v30 }
 0x4b7   : > { %v972_v57 = vpop.f32.mrb[6].mxu1 }
 0x4b8   : > { %976 = vst [vmem:[%s298_s12] sm:$0xff] %v972_v57  ;;  %v1276_v32 = vpop.f32.mrb[7].mxu1 }
 0x4b9   : > { %1731 = shalt.err (!%p1728_p12)
}
 0x4ba   : > { %s1732_s29 = scalar_lea.hbm %s2118_s10, 128  ;;  %s1736_s28 = scalar_lea.hbm %s2165_s5, 256 }
 0x4bb   : > { %p1733_p13 = scmp.ne.s32.totalorder %s2118_s10, %s1732_s29  ;;  %p1737_p9 = scmp.lt.u32.totalorder %s2118_s10, %s2165_s5 }
 0x4bc   : > { %p1738_p4 = scmp.lt.u32.totalorder %s1736_s28, %s1732_s29  ;;  %p1740_p6 = scmp.lt.u32.totalorder %s1732_s29, %s2118_s10 }
 0x4bd   : > { %p1734_p3 = pnand %p1733_p13, %p2183_p0 }
 0x4be   : > { %p1739_p8 = por %p1738_p4, %p1737_p9 }
 0x4bf   : > { %p1735_p7 = pneg %p1734_p3 }
 0x4c0   : > { %p1741_p2 = por %p1740_p6, %p1739_p8 }
 0x4c2   : > { %p1742_p5 = pnand %p1741_p2, %p1735_p7 }
 0x4c4   : > { %1745 = shalt.err (!%p1742_p5)
}
 0x4c5   : > { %1500 = dma.vmem_to_hbm [thread:$0]  (%p2183_p0), %s2113_s27, 128, %s2118_s10, %s978_s16  }
 0x4c6 PF: > { %s1003_s12 = sand.u32 1, %s1780_s18   ;;  %p2184_p10 = scmp.ne.s32.totalorder %s2176_s14, 0 }
 0x4c7   : > { %p2185_p1 = scmp.ge.s32.totalorder %s1792_s21, 2  ;;  %s1004_s30 = scalar_lea.sflag [#allocation4], %s1003_s12 }
 0x4c9   : > { %p1520_p11 = pnand %p2185_p1, %p2184_p10 }
 0x4cb   : > { %1775 = dma.done.wait (!%p1520_p11), %s1004_s30, 128  }
 0x4cc   : > { %1777 = vsyncadd (!%p1520_p11), %s1004_s30, 4294967168  ;;  %p20_p12 = scmp.ge.s32.totalorder %s1982_s11, 4   ;;  %s2186_s18 = smov %s1784_s19 }
 0x4cd   : > { %s2187_s19 = smov %s1788_s20  ;;  %s2188_s20 = smov %s1993_s9 }
 0x4ce   : > { %s2189_s21 = smov %s1982_s11  ;;  %22 = sbr.rel (!%p20_p12) target bundleno = 7 (0x7), region = 101 }
 0x4d5   :  { %1009 = vsyncpa [#allocation3], 1 }
 0x4d6   :  { %1011 = vsyncpa [#allocation3 + $0x1], 1 }
 0x4d7   :  { %1012 = vsyncpa [#allocation6], 1 }
 0x4d8   :  { %1013 = vsyncpa [#allocation9], 1 }
 0x4d9   :  { %1014 = vsyncpa [#allocation4], 1 }
 0x4da   :  { %1016 = vsyncpa [#allocation4 + $0x1], 1 }

</bundles_post_ra>
